<compile_context>
chip_gen: v5e
topology: v5e:2x2
jax: 0.10.0
libtpu: 0.0.40
codegen_flags: <defaults>
</compile_context>

<pallas_src>
import math

import jax
import jax.numpy as jnp
from jax import lax
from jax.experimental import pallas as pl
from jax.experimental.pallas import tpu as pltpu

_LANES = 128
_SUBLANES = 8
_ROW_ALIGN = 32                    # covers int8 (32) / bf16 (16) / f32 (8) packing
_CHUNK_ROWS = 256                  # inner compute chunk (bounds live ranges)
_INPUT_VMEM_BUDGET = 16 << 20      # double-buffered input tiles, bytes
_VMEM_LIMIT_BYTES = 32 << 20       # scoped-VMEM override, legal on v5e..v7x


def _cdiv(a, b):
    return -(-a // b)


def ss_loss(pred, target, smooth: float = 1.0):
    """Pallas TPU implementation of SSLoss.forward; returns a scalar f32."""
    p = jnp.squeeze(pred, axis=1)
    if p.shape != target.shape:
        raise ValueError(f"shape mismatch: {p.shape} vs {target.shape}")
    b = p.shape[0]
    n = math.prod(p.shape[1:])                 # true per-batch element count

    x = p.reshape(b, n)
    t = target.reshape(b, n)

    # ---- layout: (b, rows, 128) -------------------------------------------
    rows = _cdiv(n, _LANES)
    rows_phys = max(rows, _ROW_ALIGN)          # tiny inputs: round up to one slab
    n_phys = rows_phys * _LANES
    if n_phys != n:
        # Only to lane / 32-row granularity (never to the large tile size).
        # Exact: padded pred/target are zero, so they contribute 0 to every sum.
        x = jnp.pad(x, ((0, 0), (0, n_phys - n)))
        t = jnp.pad(t, ((0, 0), (0, n_phys - n)))
    rows = rows_phys
    x = x.reshape(b, rows, _LANES)
    t = t.reshape(b, rows, _LANES)

    # ---- tile geometry ------------------------------------------------------
    bytes_per_row = _LANES * (jnp.dtype(x.dtype).itemsize + jnp.dtype(t.dtype).itemsize)
    max_block_rows = (_INPUT_VMEM_BUDGET // (2 * bytes_per_row)) // _CHUNK_ROWS * _CHUNK_ROWS
    max_block_rows = max(max_block_rows, _CHUNK_ROWS)

    # Split the row-tile range across two "parallel" slots when batch == 1 so a
    # v7x chip (2 TensorCores) uses both HBM paths; harmless on v5e/v6e.
    num_splits = 2 if (b == 1 and rows >= 2 * _ROW_ALIGN) else 1

    block_rows = min(max_block_rows, (_cdiv(rows, num_splits) // _ROW_ALIGN) * _ROW_ALIGN)
    block_rows = max(block_rows, _ROW_ALIGN)

    num_tiles = _cdiv(rows, block_rows)        # tiles covering the data
    tiles_per_split = _cdiv(num_tiles, num_splits)
    num_full_tiles = rows // block_rows        # tiles with no out-of-bounds rows
    needs_mask = (num_splits * tiles_per_split * block_rows) != rows
    overhang = num_splits * tiles_per_split > num_tiles

    chunk = _CHUNK_ROWS if block_rows % _CHUNK_ROWS == 0 else _ROW_ALIGN
    num_chunks = block_rows // chunk
    groups = chunk // _SUBLANES

    # ---- kernel -------------------------------------------------------------
    def kernel(x_ref, t_ref, acc_ref):
        s = pl.program_id(1)
        i = pl.program_id(2)

        @pl.when(i == 0)
        def _init():
            acc_ref[...] = jnp.zeros_like(acc_ref)

        def accumulate(masked, valid_rows=None):
            def body(c, carry):
                a0, a1, a2 = carry
                row0 = c * chunk
                sl = pl.ds(pl.multiple_of(row0, chunk), chunk)
                xv = x_ref[sl, :].astype(jnp.float32)
                tv = t_ref[sl, :].astype(jnp.float32)
                if masked:
                    rid = lax.broadcasted_iota(jnp.int32, (chunk, _LANES), 0) + row0
                    keep = rid < valid_rows
                    xv = jnp.where(keep, xv, 0.0)
                    tv = jnp.where(keep, tv, 0.0)
                d = xv - tv
                d2 = d * d
                a0 = a0 + jnp.sum((d2 * tv).reshape(groups, _SUBLANES, _LANES), axis=0)
                a1 = a1 + jnp.sum(d2.reshape(groups, _SUBLANES, _LANES), axis=0)
                a2 = a2 + jnp.sum(tv.reshape(groups, _SUBLANES, _LANES), axis=0)
                return a0, a1, a2

            z = jnp.zeros((_SUBLANES, _LANES), jnp.float32)
            return lax.fori_loop(0, num_chunks, body, (z, z, z))

        def flush(acc):
            a0, a1, a2 = acc
            acc_ref[0, :, :] += a0
            acc_ref[1, :, :] += a1
            acc_ref[2, :, :] += a2

        if needs_mask:
            tile = s * tiles_per_split + i                      # global tile idx
            valid_rows = jnp.clip(rows - tile * block_rows, 0, block_rows)

            @pl.when(tile >= num_full_tiles)                    # partial / overhang tile
            def _edge():
                flush(accumulate(True, valid_rows))

            @pl.when(tile < num_full_tiles)                     # fully valid: no mask ops
            def _full():
                flush(accumulate(False))
        else:
            flush(accumulate(False))

    # ---- index maps ----------------------------------------------------------
    def in_index_map(bi, s, i):
        tile = s * tiles_per_split + i
        if overhang:
            tile = jnp.minimum(tile, num_tiles - 1)   # keep DMA in bounds; masked to 0
        return (bi, tile, 0)

    def out_index_map(bi, s, i):
        return (bi * num_splits + s, 0, 0, 0)

    partials = pl.pallas_call(
        kernel,
        out_shape=jax.ShapeDtypeStruct((b * num_splits, 3, _SUBLANES, _LANES),
                                       jnp.float32),
        grid_spec=pltpu.PrefetchScalarGridSpec(
            num_scalar_prefetch=0,
            grid=(b, num_splits, tiles_per_split),
            in_specs=[
                pl.BlockSpec((None, block_rows, _LANES), in_index_map),
                pl.BlockSpec((None, block_rows, _LANES), in_index_map),
            ],
            out_specs=pl.BlockSpec((None, 3, _SUBLANES, _LANES), out_index_map),
        ),
        compiler_params=pltpu.CompilerParams(
            dimension_semantics=("parallel", "parallel", "arbitrary"),
            vmem_limit_bytes=_VMEM_LIMIT_BYTES),
    )(x, t)

    # Tiny epilogue: cross-lane reductions + scalar math per batch.
    sums = jnp.sum(partials.reshape(b, num_splits, 3, _SUBLANES, _LANES),
                   axis=(1, 3, 4))                              # (b, 3)
    s_d2t, s_d2, s_t = sums[:, 0], sums[:, 1], sums[:, 2]
    s1 = s_d2t / (smooth + s_t)
    s2 = (s_d2 - s_d2t) / (smooth + (float(n) - s_t))
    return jnp.mean(0.05 * s1 + 0.95 * s2)


def _reference(pred, target, smooth: float = 1.0):
    """Pure-JAX transcription of SSLoss.forward."""
    p = jnp.squeeze(pred, axis=1).astype(jnp.float32)
    t = target.astype(jnp.float32)
    d2 = (p - t) ** 2
    axes = tuple(range(1, p.ndim))
    s1 = jnp.sum(d2 * t, axis=axes) / (smooth + jnp.sum(t, axis=axes))
    s2 = jnp.sum(d2 * (1.0 - t), axis=axes) / (smooth + jnp.sum(1.0 - t, axis=axes))
    return jnp.mean(0.05 * s1 + 0.95 * s2)


if __name__ == "__main__":
    key = jax.random.PRNGKey(0)
    k1, k2, k3, k4 = jax.random.split(key, 4)

    # Case 1: aligned shapes; binary target streamed as int8 (1 byte/elem HBM).
    pred = jax.random.uniform(k1, (2, 1, 4, 32, 32), dtype=jnp.float32)
    target_bits = jax.random.uniform(k2, (2, 4, 32, 32)) > 0.5
    loss = jax.block_until_ready(ss_loss(pred, target_bits.astype(jnp.int8)))
    ref = _reference(pred, target_bits.astype(jnp.float32))
    assert jnp.allclose(loss, ref, rtol=1e-5, atol=1e-6), (loss, ref)

    # Case 2: ragged batch-1 float target — exercises the lane pad, the
    # in-kernel partial-tile mask, edge blocks, and the 2-way split path.
    pred2 = jax.random.uniform(k3, (1, 1, 3, 40, 130), dtype=jnp.float32)
    target2 = (jax.random.uniform(k4, (1, 3, 40, 130)) > 0.5).astype(jnp.float32)
    loss2 = jax.block_until_ready(ss_loss(pred2, target2))
    ref2 = _reference(pred2, target2)
    assert jnp.allclose(loss2, ref2, rtol=1e-5, atol=1e-6), (loss2, ref2)

    print("KERNEL_OK")
</pallas_src>

<mosaic_0001>
module attributes {stable_mosaic.version = 11 : i64} {
  func.func @kernel(%arg0: i32, %arg1: i32, %arg2: i32, %arg3: memref<1x32x128xf32, #tpu.memory_space<vmem>>, %arg4: memref<1x32x128xi8, #tpu.memory_space<vmem>>, %arg5: memref<1x3x8x128xf32, #tpu.memory_space<vmem>>) attributes {dimension_semantics = [#tpu.dimension_semantics<parallel>, #tpu.dimension_semantics<parallel>, #tpu.dimension_semantics<arbitrary>], iteration_bounds = array<i64: 2, 1, 1>, scalar_prefetch = 0 : i64, scratch_operands = 0 : i64, tpu.core_type = #tpu.core_type<tc>, window_params = [{transform_indices = @transform_0, window_bounds = array<i64: 1, 32, 128>}, {transform_indices = @transform_1, window_bounds = array<i64: 1, 32, 128>}, {transform_indices = @transform_2, window_bounds = array<i64: 1, 3, 8, 128>}]} {
    %c0_i32 = arith.constant 0 : i32
    %0 = arith.cmpi eq, %arg2, %c0_i32 : i32
    %1 = arith.extui %0 : i1 to i32
    %c0_i32_0 = arith.constant 0 : i32
    %2 = arith.cmpi ne, %1, %c0_i32_0 : i32
    scf.if %2 {
      %cst_30 = arith.constant 0.000000e+00 : f32
      %43 = vector.broadcast %cst_30 : f32 to vector<3x8x128xf32>
      %c0_31 = arith.constant 0 : index
      %c0_32 = arith.constant 0 : index
      %c0_33 = arith.constant 0 : index
      %c0_34 = arith.constant 0 : index
      %44 = vector.load %arg5[%c0_31, %c0_32, %c0_33, %c0_34] : memref<1x3x8x128xf32, #tpu.memory_space<vmem>>, vector<1x3x8x128xf32>
      %45 = vector.shape_cast %44 : vector<1x3x8x128xf32> to vector<3x8x128xf32>
      %46 = vector.shape_cast %43 : vector<3x8x128xf32> to vector<1x3x8x128xf32>
      tpu.vector_store %arg5[%c0_31, %c0_32, %c0_33, %c0_34], %46 {strides = array<i32>} : memref<1x3x8x128xf32, #tpu.memory_space<vmem>>, vector<1x3x8x128xf32>,
    } else {
    }
    %cst = arith.constant 0.000000e+00 : f32
    %3 = vector.broadcast %cst : f32 to vector<8x128xf32>
    %c0_i32_1 = arith.constant 0 : i32
    %c32_i32 = arith.constant 32 : i32
    %4 = arith.muli %c0_i32_1, %c32_i32 : i32
    %5 = tpu.assume_multiple %4, 32 : i32
    %c0 = arith.constant 0 : index
    %6 = arith.index_cast %5 : i32 to index
    %c0_2 = arith.constant 0 : index
    %7 = vector.load %arg3[%c0, %6, %c0_2] : memref<1x32x128xf32, #tpu.memory_space<vmem>>, vector<1x32x128xf32>
    %8 = vector.shape_cast %7 : vector<1x32x128xf32> to vector<32x128xf32>
    %c0_3 = arith.constant 0 : index
    %9 = arith.index_cast %5 : i32 to index
    %c0_4 = arith.constant 0 : index
    %10 = vector.load %arg4[%c0_3, %9, %c0_4] : memref<1x32x128xi8, #tpu.memory_space<vmem>>, vector<1x32x128xi8>
    %11 = vector.shape_cast %10 : vector<1x32x128xi8> to vector<32x128xi8>
    %12 = arith.sitofp %11 : vector<32x128xi8> to vector<32x128xf32>
    %13 = arith.subf %8, %12 : vector<32x128xf32>
    %14 = arith.mulf %13, %13 : vector<32x128xf32>
    %15 = arith.mulf %14, %12 : vector<32x128xf32>
    %16 = vector.shape_cast %15 : vector<32x128xf32> to vector<4x8x128xf32>
    %cst_5 = arith.constant dense<0.000000e+00> : vector<8x128xf32>
    %17 = vector.multi_reduction <add>, %16, %cst_5 [0] : vector<4x8x128xf32> to vector<8x128xf32>
    %18 = arith.addf %3, %17 : vector<8x128xf32>
    %19 = vector.shape_cast %14 : vector<32x128xf32> to vector<4x8x128xf32>
    %cst_6 = arith.constant dense<0.000000e+00> : vector<8x128xf32>
    %20 = vector.multi_reduction <add>, %19, %cst_6 [0] : vector<4x8x128xf32> to vector<8x128xf32>
    %21 = arith.addf %3, %20 : vector<8x128xf32>
    %22 = vector.shape_cast %12 : vector<32x128xf32> to vector<4x8x128xf32>
    %cst_7 = arith.constant dense<0.000000e+00> : vector<8x128xf32>
    %23 = vector.multi_reduction <add>, %22, %cst_7 [0] : vector<4x8x128xf32> to vector<8x128xf32>
    %24 = arith.addf %3, %23 : vector<8x128xf32>
    %c1_i32 = arith.constant 1 : i32
    %c0_8 = arith.constant 0 : index
    %c0_9 = arith.constant 0 : index
    %c0_10 = arith.constant 0 : index
    %c0_11 = arith.constant 0 : index
    %25 = vector.load %arg5[%c0_8, %c0_9, %c0_10, %c0_11] : memref<1x3x8x128xf32, #tpu.memory_space<vmem>>, vector<1x1x8x128xf32>
    %26 = vector.shape_cast %25 : vector<1x1x8x128xf32> to vector<8x128xf32>
    %27 = arith.addf %26, %18 : vector<8x128xf32>
    %c0_12 = arith.constant 0 : index
    %c0_13 = arith.constant 0 : index
    %c0_14 = arith.constant 0 : index
    %c0_15 = arith.constant 0 : index
    %28 = vector.load %arg5[%c0_12, %c0_13, %c0_14, %c0_15] : memref<1x3x8x128xf32, #tpu.memory_space<vmem>>, vector<1x1x8x128xf32>
    %29 = vector.shape_cast %28 : vector<1x1x8x128xf32> to vector<8x128xf32>
    %30 = vector.shape_cast %27 : vector<8x128xf32> to vector<1x1x8x128xf32>
    tpu.vector_store %arg5[%c0_12, %c0_13, %c0_14, %c0_15], %30 {strides = array<i32>} : memref<1x3x8x128xf32, #tpu.memory_space<vmem>>, vector<1x1x8x128xf32>,
    %c0_16 = arith.constant 0 : index
    %c1 = arith.constant 1 : index
    %c0_17 = arith.constant 0 : index
    %c0_18 = arith.constant 0 : index
    %31 = vector.load %arg5[%c0_16, %c1, %c0_17, %c0_18] : memref<1x3x8x128xf32, #tpu.memory_space<vmem>>, vector<1x1x8x128xf32>
    %32 = vector.shape_cast %31 : vector<1x1x8x128xf32> to vector<8x128xf32>
    %33 = arith.addf %32, %21 : vector<8x128xf32>
    %c0_19 = arith.constant 0 : index
    %c1_20 = arith.constant 1 : index
    %c0_21 = arith.constant 0 : index
    %c0_22 = arith.constant 0 : index
    %34 = vector.load %arg5[%c0_19, %c1_20, %c0_21, %c0_22] : memref<1x3x8x128xf32, #tpu.memory_space<vmem>>, vector<1x1x8x128xf32>
    %35 = vector.shape_cast %34 : vector<1x1x8x128xf32> to vector<8x128xf32>
    %36 = vector.shape_cast %33 : vector<8x128xf32> to vector<1x1x8x128xf32>
    tpu.vector_store %arg5[%c0_19, %c1_20, %c0_21, %c0_22], %36 {strides = array<i32>} : memref<1x3x8x128xf32, #tpu.memory_space<vmem>>, vector<1x1x8x128xf32>,
    %c0_23 = arith.constant 0 : index
    %c2 = arith.constant 2 : index
    %c0_24 = arith.constant 0 : index
    %c0_25 = arith.constant 0 : index
    %37 = vector.load %arg5[%c0_23, %c2, %c0_24, %c0_25] : memref<1x3x8x128xf32, #tpu.memory_space<vmem>>, vector<1x1x8x128xf32>
    %38 = vector.shape_cast %37 : vector<1x1x8x128xf32> to vector<8x128xf32>
    %39 = arith.addf %38, %24 : vector<8x128xf32>
    %c0_26 = arith.constant 0 : index
    %c2_27 = arith.constant 2 : index
    %c0_28 = arith.constant 0 : index
    %c0_29 = arith.constant 0 : index
    %40 = vector.load %arg5[%c0_26, %c2_27, %c0_28, %c0_29] : memref<1x3x8x128xf32, #tpu.memory_space<vmem>>, vector<1x1x8x128xf32>
    %41 = vector.shape_cast %40 : vector<1x1x8x128xf32> to vector<8x128xf32>
    %42 = vector.shape_cast %39 : vector<8x128xf32> to vector<1x1x8x128xf32>
    tpu.vector_store %arg5[%c0_26, %c2_27, %c0_28, %c0_29], %42 {strides = array<i32>} : memref<1x3x8x128xf32, #tpu.memory_space<vmem>>, vector<1x1x8x128xf32>,
    return
  }
  func.func @transform_0(%arg0: i32, %arg1: i32, %arg2: i32) -> (i32, i32, i32) {
    %c1_i32 = arith.constant 1 : i32
    %0 = arith.muli %arg1, %c1_i32 : i32
    %1 = arith.addi %0, %arg2 : i32
    %c0_i32 = arith.constant 0 : i32
    %c0_i32_0 = arith.constant 0 : i32
    return %arg0, %1, %c0_i32 : i32, i32, i32
  }
  func.func @transform_1(%arg0: i32, %arg1: i32, %arg2: i32) -> (i32, i32, i32) {
    %c1_i32 = arith.constant 1 : i32
    %0 = arith.muli %arg1, %c1_i32 : i32
    %1 = arith.addi %0, %arg2 : i32
    %c0_i32 = arith.constant 0 : i32
    %c0_i32_0 = arith.constant 0 : i32
    return %arg0, %1, %c0_i32 : i32, i32, i32
  }
  func.func @transform_2(%arg0: i32, %arg1: i32, %arg2: i32) -> (i32, i32, i32, i32) {
    %c1_i32 = arith.constant 1 : i32
    %0 = arith.muli %arg0, %c1_i32 : i32
    %1 = arith.addi %0, %arg1 : i32
    %c0_i32 = arith.constant 0 : i32
    %c0_i32_0 = arith.constant 0 : i32
    %c0_i32_1 = arith.constant 0 : i32
    %c0_i32_2 = arith.constant 0 : i32
    return %1, %c0_i32, %c0_i32_0, %c0_i32_1 : i32, i32, i32, i32
  }
}

</mosaic_0001>

<bundles_post_ra>
// kernel: tpu_custom_call.1
= control target key start
LH: loop header
LB: loop body
LE: loop exit
PB: predicated region body
PF: predicated region fallthrough
CT: control target
= control target key end

     0   :  { %7 = vsyncpa [#allocation3], 0  ;;  %s827_s0 = inlined_call_operand.hbm [shape: f32[2,32,128], index: 0, kind: input, shape index: {}]   ;;  %s828_s1 = inlined_call_operand.hbm [shape: s8[2,32,128], index: 1, kind: input, shape index: {}]   ;;  %s829_s2 = inlined_call_operand.hbm [shape: f32[2,3,8,128], index: 2, kind: output, shape index: {}]  }
   0x1   :  { %9 = vsyncpa [#allocation3 + $0x1], 0 }
   0x2   :  { %10 = vsyncpa [#allocation6], 0 }
   0x3   :  { %12 = vsyncpa [#allocation6 + $0x1], 0 }
   0x4   :  { %13 = vsyncpa [#allocation4], 0 }
   0x5   :  { %15 = vsyncpa [#allocation4 + $0x1], 0  ;;  %s688_s9 = smov 0   ;;  %s690_s10 = smov 0  }
   0x6   :  { %s692_s11 = smov 0   ;;  %s694_s12 = smov 0  }
   0x7   :  { %s696_s13 = smov 0   ;;  %s698_s14 = smov 0  }
   0x8 LB: > { %s427_s15 = sadd.s32 4294967295, %s667_s14   ;;  %s428_s16 = sadd.s32 4294967294, %s667_s14   ;;  %s667_s14 = sphi %s698_s14, %s21_s14   ;;  %s663_s13 = sphi %s696_s13, %s839_s13   ;;  %s659_s12 = sphi %s694_s12, %s838_s12   ;;  %s655_s11 = sphi %s692_s11, %s837_s11   ;;  %s651_s10 = sphi %s690_s10, %s836_s10   ;;  %s647_s9 = sphi %s688_s9, %s835_s9  }
   0x9   : > { %s40_s17 = sadd.s32 1, %s663_s13  ;;  %s51_s18 = sadd.s32 1, %s655_s11 }
   0xa   : > { %p42_p0 = scmp.ge.s32.totalorder %s40_s17, 2  ;;  %p58_p1 = scmp.ne.s32.totalorder %s655_s11, %s651_s10 }
   0xb   : > { %p59_p2 = scmp.eq.s32.totalorder %s667_s14, 0  ;;  %p64_p3 = scmp.ne.s32.totalorder %s651_s10, %s647_s9 }
   0xc   : > { %s841_s17 = smov (%p42_p0, %s40_s17), 0  ;;  %p65_p5 = scmp.eq.s32.totalorder %s427_s15, 0 }
   0xd   : > { %p729_p4 = por %p59_p2, %p58_p1  ;;  %s46_s20 = ssub.s32 %s663_s13, %s841_s17 }
   0xe   : > { %p120_p6 = scmp.eq.s32.totalorder %s427_s15, 1  ;;  %p49_p7 = scmp.eq.s32.totalorder %s46_s20, 0 }
   0xf   : > { %p735_p8 = por %p65_p5, %p64_p3  ;;  %p126_p10 = scmp.eq.s32.totalorder %s428_s16, 1 }
  0x10   : > { %p739_p9 = por %p120_p6, %p58_p1  ;;  %p430_p12 = scmp.ge.s32.totalorder %s667_s14, 2 }
  0x11   : > { %s744_s23 = scalar_select %p49_p7, %s655_s11, %s51_s18  }
  0x12   : > { %p746_p11 = por %p126_p10, %p64_p3  ;;  %p466_p13 = scmp.lt.s32.totalorder %s667_s14, 2 }
  0x13   : > { %s146_s25 = sand.u32 1, %s655_s11   ;;  %s446_s27 = sshll.u32 %s663_s13, 5 }
  0x14   : > { %s431_s26 = sshll.u32 %s146_s25, 5  ;;  %s158_s30 = scalar_lea.hbm %s827_s0, %s446_s27 }
  0x15   : > { %s150_s3 = scalar_lea.vmem [#allocation2], %s431_s26  ;;  %s159_s5 = sshll.u32 %s158_s30, 4  ;;  %s160_s5 = int_to_ptr.hbm [resolvable:$true] %s159_s5 }
  0x16   : > { %s161_s4 = sshll.u32 %s150_s3, 4  ;;  %p759_p0 = pnand %p466_p13, %p729_p4  ;;  %s162_s4 = int_to_ptr.vmem [resolvable:$true] %s161_s4 }
  0x17   : > { %p436_p1 = scmp.ge.s32.totalorder %s667_s14, 1  ;;  %s147_s7 = scalar_lea.sflag [#allocation3], %s146_s25 }
  0x18   : > { %s669_s8 = smov 128   ;;  %s670_s15 = smov 8  }
  0x19   : > { %458 = dma.hbm_to_vmem [thread:$0]  (!%p759_p0), %s160_s5, 512, %s162_s4, %s147_s7, %s669_s8, %s669_s8, %s670_s15  }
  0x1a   : > { %p190_p2 = scmp.lt.s32.totalorder %s667_s14, 3  ;;  %s434_s16 = sshll.u32 %s146_s25, 3 }
  0x1b   : > { %s435_s18 = sshll.u32 %s663_s13, 3  ;;  %s175_s27 = scalar_lea.vmem [#allocation5], %s434_s16 }
  0x1c   : > { %p191_p3 = pnand %p436_p1, %p190_p2  ;;  %s181_s19 = scalar_lea.hbm %s828_s1, %s435_s18 }
  0x1d   : > { %s185_s28 = sshll.u32 %s175_s27, 4  ;;  %s183_s29 = sshll.u32 %s181_s19, 4  ;;  %s186_s28 = int_to_ptr.vmem [resolvable:$true] %s185_s28  ;;  %s184_s29 = int_to_ptr.hbm [resolvable:$true] %s183_s29 }
  0x1e   : > { %s172_s30 = scalar_lea.sflag [#allocation6], %s146_s25  ;;  %194 = sbr.rel (%p191_p3) target bundleno = 60 (0x3c), region = 28 }
  0x1f   : > { %461 = dma.hbm_to_vmem [thread:$0]  (!%p759_p0), %s184_s29, 128, %s186_s28, %s172_s30  }
  0x20   : > { %s774_s3 = sand.u32 (!%p191_p3), 1, %s651_s10  }
  0x21   : > { %s437_s4 = sshll.u32 (!%p191_p3), %s774_s3, 5  ;;  %s197_s5 = scalar_lea.sflag (!%p191_p3), [#allocation3], %s774_s3 }
  0x22   : > { %s200_s7 = scalar_lea.vmem (!%p191_p3), [#allocation2], %s437_s4 }
  0x23   : > { %634 = dma.done.wait (%p735_p8), %s197_s5, 512  }
  0x24   : > { %636 = vsyncadd (%p735_p8), %s197_s5, 4294966784  ;;  %s438_s25 = sshll.u32 %s774_s3, 3  ;;  %s207_s6 = scalar_lea.sflag [#allocation6], %s774_s3 }
  0x25   : > { %s210_s8 = scalar_lea.vmem [#allocation5], %s438_s25 }
  0x26   : > { %638 = dma.done.wait (%p735_p8), %s207_s6, 128  }
  0x27   : > { %640 = vsyncadd (%p735_p8), %s207_s6, 4294967168  ;;  %v252_v0 = vld [vmem:[%s210_s8] sm:$0xff]  ;;  %v250_v7 = vld [vmem:[%s200_s7 + $0x10] sm:$0xff]  ;;  %s447_s21 = smul.u32 24, %s774_s3  ;;  %s297_s27 = scalar_lea.sflag [#allocation4], %s774_s3 }
  0x28   : > { %v248_v1 = vld [vmem:[%s200_s7] sm:$0xff]  ;;  %v253_v2 = vunpack.c.0.s8 %v252_v0  ;;  %v254_v3 = vunpack.c.1.s8 %v252_v0  ;;  %v255_v4 = vunpack.c.2.s8 %v252_v0  ;;  %v256_v5 = vunpack.c.3.s8 %v252_v0  ;;  %v249_v6 = vld [vmem:[%s200_s7 + $0x8] sm:$0xff]  ;;  %v251_v8 = vld [vmem:[%s200_s7 + $0x18] sm:$0xff]  ;;  %s448_s15 = smul.u32 24, %s659_s12  ;;  %s601_s5 = scalar_lea.hbm %s829_s2, 48 }
  0x29   : > { %s236_s26 = scalar_lea.vmem [#allocation7], %s447_s21 }
  0x2a   : > { %v257_v9 = vcvt.s32.f32 %v253_v2  ;;  %v258_v10 = vcvt.s32.f32 %v254_v3  ;;  %v259_v11 = vcvt.s32.f32 %v255_v4  ;;  %v260_v12 = vcvt.s32.f32 %v256_v5  ;;  %s309_s20 = scalar_lea.hbm %s829_s2, %s448_s15  ;;  %s310_s12 = sshll.u32 %s236_s26, 4  ;;  %s311_s12 = int_to_ptr.vmem [resolvable:$true] %s310_s12 }
  0x2b   : > { %s312_s19 = sshll.u32 %s309_s20, 4  ;;  %s313_s19 = int_to_ptr.hbm [resolvable:$true] %s312_s19 }
  0x2c   : > { %v261_v13 = vsub.f32 %v248_v1, %v257_v9  ;;  %v262_v14 = vsub.f32 %v249_v6, %v258_v10  ;;  %v263_v15 = vsub.f32 %v250_v7, %v259_v11  ;;  %v264_v16 = vsub.f32 %v251_v8, %v260_v12  ;;  %s595_s28 = sshra.s32 %s313_s19, 4  ;;  %s596_s28 = int_to_ptr.hbm [resolvable:$true] %s595_s28 }
  0x2d   : > { %v281_v17 = vadd.f32 %v258_v10, %v257_v9  ;;  %s597_s29 = scalar_lea.hbm %s596_s28, 24  ;;  %p602_p7 = scmp.lt.s32.totalorder %s596_s28, %s829_s2 }
  0x2e   : > { %v265_v18 = vmul.f32 %v261_v13, %v261_v13  ;;  %v266_v19 = vmul.f32 %v262_v14, %v262_v14  ;;  %v267_v20 = vmul.f32 %v263_v15, %v263_v15  ;;  %v268_v21 = vmul.f32 %v264_v16, %v264_v16  ;;  %p598_p4 = scmp.ne.s32.totalorder %s596_s28, %s597_s29  ;;  %p603_p8 = scmp.lt.s32.totalorder %s601_s5, %s597_s29 }
  0x2f   : > { %v282_v22 = vadd.f32 %v281_v17, %v259_v11 }
  0x30   : > { %v269_v23 = vmul.f32 %v265_v18, %v257_v9  ;;  %v270_v24 = vmul.f32 %v266_v19, %v258_v10  ;;  %v271_v25 = vmul.f32 %v267_v20, %v259_v11  ;;  %v277_v26 = vadd.f32 %v266_v19, %v265_v18  ;;  %p599_p5 = pnand %p598_p4, %p739_p9  ;;  %p604_p10 = por %p603_p8, %p602_p7 }
  0x31   : > { %v283_v27 = vadd.f32 %v282_v22, %v260_v12  ;;  %v272_v28 = vmul.f32 %v268_v21, %v260_v12 }
  0x32   : > { %v273_v29 = vadd.f32 %v270_v24, %v269_v23  ;;  %v278_v30 = vadd.f32 %v277_v26, %v267_v20  ;;  %p600_p6 = pneg %p599_p5 }
  0x33   : > { %442 = vst [vmem:[%s236_s26 + $0x10] sm:$0xff] %v283_v27 }
  0x34   : > { %v274_v31 = vadd.f32 %v273_v29, %v271_v25  ;;  %v279_v32 = vadd.f32 %v278_v30, %v268_v21  ;;  %p605_p13 = pnand %p604_p10, %p600_p6 }
  0x36   : > { %v275_v33 = vadd.f32 %v274_v31, %v272_v28  ;;  %440 = vst [vmem:[%s236_s26 + $0x8] sm:$0xff] %v279_v32 }
  0x38   : > { %287 = vst [vmem:[%s236_s26] sm:$0xff] %v275_v33 }
  0x39   : > { %608 = shalt.err (!%p605_p13)
}
  0x3a   : > { %s671_s3 = smov 128   ;;  %s672_s6 = smov 8  }
  0x3b   : > { %453 = dma.vmem_to_hbm [thread:$0]  (%p739_p9), %s311_s12, 384, %s313_s19, %s297_s27, %s671_s3, %s671_s3, %s672_s6  }
  0x3c PF: > { %s327_s8 = sand.u32 1, %s647_s9   ;;  %p463_p0 = pnand %p430_p12, %p746_p11 }
  0x3d   : > { %s328_s21 = scalar_lea.sflag [#allocation4], %s327_s8 }
  0x3e   : > { %p464_p1 = pneg %p463_p0 }
  0x40   : > { %642 = dma.done.wait (%p464_p1), %s328_s21, 384  }
  0x41   : > { %644 = vsyncadd (%p464_p1), %s328_s21, 4294966912  ;;  %s21_s14 = sadd.s32 1, %s667_s14   ;;  %s835_s9 = smov %s651_s10 }
  0x42   : > { %p18_p2 = scmp.ge.s32.totalorder %s21_s14, 4   ;;  %s836_s10 = smov %s655_s11 }
  0x43   : > { %s837_s11 = smov %s744_s23  ;;  %s838_s12 = smov %s663_s13 }
  0x44   : > { %s839_s13 = smov %s841_s17  ;;  %20 = sbr.rel (!%p18_p2) target bundleno = 8 (0x8), region = 92 }
  0x49   :  { %334 = vsyncpa [#allocation3], 1 }
  0x4a   :  { %336 = vsyncpa [#allocation3 + $0x1], 1 }
  0x4b   :  { %337 = vsyncpa [#allocation6], 1 }
  0x4c   :  { %339 = vsyncpa [#allocation6 + $0x1], 1 }
  0x4d   :  { %340 = vsyncpa [#allocation4], 1 }
  0x4e   :  { %342 = vsyncpa [#allocation4 + $0x1], 1 }

</bundles_post_ra>
